<compile_context>
chip_gen: v6e
topology: v6e:2x2x1
jax: 0.10.0
libtpu: 0.0.40
codegen_flags: <defaults>
</compile_context>

<pallas_src>
import functools

import jax
import jax.numpy as jnp
from jax.experimental import pallas as pl
from jax.experimental.pallas import tpu as pltpu


def _make_divisible(v, divisor, min_value=None):
    if min_value is None:
        min_value = divisor
    new_v = max(min_value, int(v + divisor / 2) // divisor * divisor)
    if new_v < 0.9 * v:
        new_v += divisor
    return new_v


def _cdiv(a, b):
    return -(-a // b)


def _ceil_to(a, m):
    return _cdiv(a, m) * m


def _se_kernel(x_ref, w1t_ref, b1_ref, w2t_ref, b2_ref, o_ref, *, inv_hw):
    # x_ref: (Nb, C, HWp) block of the (padded) input, resident in VMEM.

    # Global average pool: accumulate in f32, fused cast into the lane
    # reduction (no full-tile f32 temp). Padded lanes are zero, so dividing
    # by the true HW (inv_hw) gives the exact mean.
    pooled = jnp.sum(x_ref[...].astype(jnp.float32), axis=-1) * inv_hw  # (Nb, C)

    # conv_reduce: 1x1 conv == matmul, bias, ReLU    (Nb, C) @ (C, R)
    h = jnp.dot(pooled, w1t_ref[...].astype(jnp.float32),
                preferred_element_type=jnp.float32)
    h = jnp.maximum(h + b1_ref[...].astype(jnp.float32), 0.0)

    # dropout2d with p=0.0 (and eval semantics) is the identity.
    # TODO(synk): training-mode channel dropout not implemented (p=0.0 here).

    # conv_expand: 1x1 conv, bias, hard_sigmoid      (Nb, R) @ (R, C)
    g = jnp.dot(h, w2t_ref[...].astype(jnp.float32),
                preferred_element_type=jnp.float32)
    g = g + b2_ref[...].astype(jnp.float32)
    g = jnp.clip(g + 3.0, 0.0, 6.0) * 0.16666666666666666  # relu6(x+3)/6

    # Channel-wise rescale: read the input tile again (still in VMEM) and
    # multiply in the output dtype; broadcast (Nb, C, 1) over lanes.
    o_ref[...] = x_ref[...] * g.astype(o_ref.dtype)[:, :, None]


def squeeze_excite(x, w1, b1, w2, b2):
    """x: (N, C, H, W); w1: (R, C); b1: (R,); w2: (C, R); b2: (C,)."""
    N, C, H, W = x.shape
    R = w1.shape[0]
    HW = H * W
    HWp = _ceil_to(HW, 128)          # lane-dense last dim
    itemsize = jnp.dtype(x.dtype).itemsize

    xf = x.reshape(N, C, HW)
    if HWp != HW:
        xf = jnp.pad(xf, ((0, 0), (0, 0), (0, HWp - HW)))   # zero-fill pad lanes

    # Block several batch elements per grid step so each step moves a few MiB,
    # while keeping >=2 grid steps when possible (megacore on v7x) and staying
    # well under the v7x VMEM budget (double-buffered in+out <= ~16 MiB).
    bytes_per_sample = C * HWp * itemsize
    target_bytes = 4 * 1024 * 1024
    Nb = max(1, min(N, target_bytes // max(bytes_per_sample, 1)))
    n_steps = _cdiv(N, Nb)
    if n_steps < 2 and N >= 2:
        Nb = _cdiv(N, 2)
        n_steps = _cdiv(N, Nb)
    Np = n_steps * Nb
    if Np != N:
        xf = jnp.pad(xf, ((0, Np - N), (0, 0), (0, 0)))

    # Pre-transpose weights so the gate is computed as batched, row-major
    # matmuls; reshape biases for (1, *) broadcast.
    w1t = w1.T                       # (C, R)
    w2t = w2.T                       # (R, C)
    b1r = b1.reshape(1, R)
    b2r = b2.reshape(1, C)

    kernel = functools.partial(_se_kernel, inv_hw=1.0 / float(HW))

    out = pl.pallas_call(
        kernel,
        out_shape=jax.ShapeDtypeStruct((Np, C, HWp), x.dtype),
        grid=(n_steps,),
        in_specs=[
            pl.BlockSpec((Nb, C, HWp), lambda n: (n, 0, 0)),
            pl.BlockSpec((C, R), lambda n: (0, 0)),
            pl.BlockSpec((1, R), lambda n: (0, 0)),
            pl.BlockSpec((R, C), lambda n: (0, 0)),
            pl.BlockSpec((1, C), lambda n: (0, 0)),
        ],
        out_specs=pl.BlockSpec((Nb, C, HWp), lambda n: (n, 0, 0)),
        compiler_params=pltpu.CompilerParams(
            dimension_semantics=("parallel",),
            vmem_limit_bytes=48 * 1024 * 1024,
        ),
        cost_estimate=pl.CostEstimate(
            flops=2 * N * C * HW + 4 * N * R * C,
            transcendentals=0,
            bytes_accessed=2 * N * C * HW * itemsize,
        ),
    )(xf, w1t, b1r, w2t, b2r)

    out = out[:N, :, :HW]
    return out.reshape(N, C, H, W)


def _reference(x, w1, b1, w2, b2):
    # pure-JAX reference for sanity checking
    pooled = jnp.mean(x, axis=(2, 3), keepdims=True)              # (N, C, 1, 1)
    h = jnp.einsum("nchw,rc->nrhw", pooled, w1) + b1[None, :, None, None]
    h = jnp.maximum(h, 0.0)
    g = jnp.einsum("nrhw,cr->nchw", h, w2) + b2[None, :, None, None]
    g = jnp.clip(g + 3.0, 0.0, 6.0) * 0.16666666666666666
    return x * g


if __name__ == "__main__":
    # module config: in_chs=16, se_ratio=0.25, divisor=4 -> reduced_chs=4
    in_chs = 16
    se_ratio = 0.25
    divisor = 4
    reduced_chs = _make_divisible(in_chs * se_ratio, divisor)

    # H=W=14 exercises the HW lane-padding path (196 -> 256)
    N, C, H, W = 2, in_chs, 14, 14

    key = jax.random.PRNGKey(0)
    kx, k1, k2, k3, k4 = jax.random.split(key, 5)

    x = jax.random.normal(kx, (N, C, H, W), dtype=jnp.float32)

    # deterministic synthetic parameters (1x1 conv weights squeezed to 2D)
    w1 = jax.random.normal(k1, (reduced_chs, in_chs), dtype=jnp.float32) * 0.25
    b1 = jax.random.normal(k2, (reduced_chs,), dtype=jnp.float32) * 0.1
    w2 = jax.random.normal(k3, (in_chs, reduced_chs), dtype=jnp.float32) * 0.25
    b2 = jax.random.normal(k4, (in_chs,), dtype=jnp.float32) * 0.1

    out = squeeze_excite(x, w1, b1, w2, b2)
    out = jax.block_until_ready(out)

    ref = _reference(x, w1, b1, w2, b2)
    assert out.shape == (N, C, H, W)
    assert jnp.allclose(out, ref, atol=1e-5, rtol=1e-5)

    print("KERNEL_OK")
</pallas_src>

<mosaic_0001>
module attributes {stable_mosaic.version = 11 : i64} {
  func.func @_se_kernel(%arg0: i32, %arg1: memref<1x16x256xf32, #tpu.memory_space<vmem>>, %arg2: memref<16x4xf32, #tpu.memory_space<vmem>>, %arg3: memref<1x4xf32, #tpu.memory_space<vmem>>, %arg4: memref<4x16xf32, #tpu.memory_space<vmem>>, %arg5: memref<1x16xf32, #tpu.memory_space<vmem>>, %arg6: memref<1x16x256xf32, #tpu.memory_space<vmem>>) attributes {dimension_semantics = [#tpu.dimension_semantics<parallel>], iteration_bounds = array<i64: 2>, scalar_prefetch = 0 : i64, scratch_operands = 0 : i64, tpu.core_type = #tpu.core_type<tc>, window_params = [{transform_indices = @transform_0, window_bounds = array<i64: 1, 16, 256>}, {pipeline_mode = #tpu.pipeline_mode<synchronous>, transform_indices = @transform_1, window_bounds = array<i64: 16, 4>}, {pipeline_mode = #tpu.pipeline_mode<synchronous>, transform_indices = @transform_2, window_bounds = array<i64: 1, 4>}, {pipeline_mode = #tpu.pipeline_mode<synchronous>, transform_indices = @transform_3, window_bounds = array<i64: 4, 16>}, {pipeline_mode = #tpu.pipeline_mode<synchronous>, transform_indices = @transform_4, window_bounds = array<i64: 1, 16>}, {transform_indices = @transform_5, window_bounds = array<i64: 1, 16, 256>}]} {
    %c0 = arith.constant 0 : index
    %c0_0 = arith.constant 0 : index
    %c0_1 = arith.constant 0 : index
    %0 = vector.load %arg1[%c0, %c0_0, %c0_1] : memref<1x16x256xf32, #tpu.memory_space<vmem>>, vector<1x16x256xf32>
    %cst = arith.constant dense<0.000000e+00> : vector<1x16xf32>
    %1 = vector.multi_reduction <add>, %0, %cst [2] : vector<1x16x256xf32> to vector<1x16xf32>
    %cst_2 = arith.constant 0.00510204071 : f32
    %2 = vector.broadcast %cst_2 : f32 to vector<1x16xf32>
    %3 = arith.mulf %1, %2 : vector<1x16xf32>
    %c0_3 = arith.constant 0 : index
    %c0_4 = arith.constant 0 : index
    %4 = vector.load %arg2[%c0_3, %c0_4] : memref<16x4xf32, #tpu.memory_space<vmem>>, vector<16x4xf32>
    %cst_5 = arith.constant dense<0.000000e+00> : vector<1x4xf32>
    %5 = tpu.matmul %3, %4, %cst_5 {dimension_numbers = #tpu.dot_dimension_numbers<[1], [0], [0], [1], [0, 0, 1, 1], [], []>} : vector<1x16xf32>, vector<16x4xf32>, vector<1x4xf32> -> vector<1x4xf32>
    %c0_6 = arith.constant 0 : index
    %c0_7 = arith.constant 0 : index
    %6 = vector.load %arg3[%c0_6, %c0_7] : memref<1x4xf32, #tpu.memory_space<vmem>>, vector<1x4xf32>
    %7 = arith.addf %5, %6 : vector<1x4xf32>
    %cst_8 = arith.constant 0.000000e+00 : f32
    %8 = vector.broadcast %cst_8 : f32 to vector<1x4xf32>
    %9 = arith.maximumf %7, %8 : vector<1x4xf32>
    %c0_9 = arith.constant 0 : index
    %c0_10 = arith.constant 0 : index
    %10 = vector.load %arg4[%c0_9, %c0_10] : memref<4x16xf32, #tpu.memory_space<vmem>>, vector<4x16xf32>
    %cst_11 = arith.constant dense<0.000000e+00> : vector<1x16xf32>
    %11 = tpu.matmul %9, %10, %cst_11 {dimension_numbers = #tpu.dot_dimension_numbers<[1], [0], [0], [1], [0, 0, 1, 1], [], []>} : vector<1x4xf32>, vector<4x16xf32>, vector<1x16xf32> -> vector<1x16xf32>
    %c0_12 = arith.constant 0 : index
    %c0_13 = arith.constant 0 : index
    %12 = vector.load %arg5[%c0_12, %c0_13] : memref<1x16xf32, #tpu.memory_space<vmem>>, vector<1x16xf32>
    %13 = arith.addf %11, %12 : vector<1x16xf32>
    %cst_14 = arith.constant 3.000000e+00 : f32
    %14 = vector.broadcast %cst_14 : f32 to vector<1x16xf32>
    %15 = arith.addf %13, %14 : vector<1x16xf32>
    %cst_15 = arith.constant 0.000000e+00 : f32
    %cst_16 = arith.constant 6.000000e+00 : f32
    %16 = vector.broadcast %cst_15 : f32 to vector<1x16xf32>
    %17 = arith.maximumf %16, %15 : vector<1x16xf32>
    %18 = vector.broadcast %cst_16 : f32 to vector<1x16xf32>
    %19 = arith.minimumf %18, %17 : vector<1x16xf32>
    %cst_17 = arith.constant 0.166666672 : f32
    %20 = vector.broadcast %cst_17 : f32 to vector<1x16xf32>
    %21 = arith.mulf %19, %20 : vector<1x16xf32>
    %c0_18 = arith.constant 0 : index
    %c0_19 = arith.constant 0 : index
    %c0_20 = arith.constant 0 : index
    %22 = vector.load %arg1[%c0_18, %c0_19, %c0_20] : memref<1x16x256xf32, #tpu.memory_space<vmem>>, vector<1x16x256xf32>
    %23 = vector.shape_cast %21 : vector<1x16xf32> to vector<1x16x1xf32>
    %24 = vector.broadcast %23 : vector<1x16x1xf32> to vector<1x16x256xf32>
    %25 = arith.mulf %22, %24 : vector<1x16x256xf32>
    %c0_21 = arith.constant 0 : index
    %c0_22 = arith.constant 0 : index
    %c0_23 = arith.constant 0 : index
    %26 = vector.load %arg6[%c0_21, %c0_22, %c0_23] : memref<1x16x256xf32, #tpu.memory_space<vmem>>, vector<1x16x256xf32>
    tpu.vector_store %arg6[%c0_21, %c0_22, %c0_23], %25 {strides = array<i32>} : memref<1x16x256xf32, #tpu.memory_space<vmem>>, vector<1x16x256xf32>,
    return
  }
  func.func @transform_0(%arg0: i32) -> (i32, i32, i32) {
    %c0_i32 = arith.constant 0 : i32
    %c0_i32_0 = arith.constant 0 : i32
    %c0_i32_1 = arith.constant 0 : i32
    return %arg0, %c0_i32, %c0_i32_0 : i32, i32, i32
  }
  func.func @transform_1(%arg0: i32) -> (i32, i32) {
    %c0_i32 = arith.constant 0 : i32
    %c0_i32_0 = arith.constant 0 : i32
    %c0_i32_1 = arith.constant 0 : i32
    return %c0_i32, %c0_i32_0 : i32, i32
  }
  func.func @transform_2(%arg0: i32) -> (i32, i32) {
    %c0_i32 = arith.constant 0 : i32
    %c0_i32_0 = arith.constant 0 : i32
    %c0_i32_1 = arith.constant 0 : i32
    return %c0_i32, %c0_i32_0 : i32, i32
  }
  func.func @transform_3(%arg0: i32) -> (i32, i32) {
    %c0_i32 = arith.constant 0 : i32
    %c0_i32_0 = arith.constant 0 : i32
    %c0_i32_1 = arith.constant 0 : i32
    return %c0_i32, %c0_i32_0 : i32, i32
  }
  func.func @transform_4(%arg0: i32) -> (i32, i32) {
    %c0_i32 = arith.constant 0 : i32
    %c0_i32_0 = arith.constant 0 : i32
    %c0_i32_1 = arith.constant 0 : i32
    return %c0_i32, %c0_i32_0 : i32, i32
  }
  func.func @transform_5(%arg0: i32) -> (i32, i32, i32) {
    %c0_i32 = arith.constant 0 : i32
    %c0_i32_0 = arith.constant 0 : i32
    %c0_i32_1 = arith.constant 0 : i32
    return %arg0, %c0_i32, %c0_i32_0 : i32, i32, i32
  }
}

</mosaic_0001>

<bundles_post_ra>
// kernel: tpu_custom_call.1
= control target key start
LH: loop header
LB: loop body
LE: loop exit
PB: predicated region body
PF: predicated region fallthrough
CT: control target
= control target key end

     0   :  { %10 = vsyncpa [#allocation3], 0  ;;  %s938_s0 = inlined_call_operand.hbm [shape: f32[2,16,256], index: 0, kind: input, shape index: {}]   ;;  %s939_s1 = inlined_call_operand.vmem [shape: f32[16,4], index: 1, kind: input, shape index: {}]   ;;  %s940_s2 = inlined_call_operand.vmem [shape: f32[1,4], index: 2, kind: input, shape index: {}]   ;;  %s941_s3 = inlined_call_operand.vmem [shape: f32[4,16], index: 3, kind: input, shape index: {}]   ;;  %s942_s4 = inlined_call_operand.vmem [shape: f32[1,16], index: 4, kind: input, shape index: {}]   ;;  %s943_s5 = inlined_call_operand.hbm [shape: f32[2,16,256], index: 5, kind: output, shape index: {}]  }
   0x1   :  { %12 = vsyncpa [#allocation3 + $0x1], 0 }
   0x2   :  { %13 = vsyncpa [#allocation4], 0 }
   0x3   :  { %15 = vsyncpa [#allocation4 + $0x1], 0  ;;  %s757_s18 = smov 0   ;;  %s759_s19 = smov 0  }
   0x4   :  { %s761_s20 = smov 0   ;;  %s763_s21 = smov 0  }
   0x5 LB: > { %s778_s22 = sadd.s32 4294967295, %s717_s21   ;;  %s537_s23 = sadd.s32 4294967294, %s717_s21   ;;  %s717_s21 = sphi %s763_s21, %s958_s21   ;;  %s713_s20 = sphi %s761_s20, %s957_s20   ;;  %s709_s19 = sphi %s759_s19, %s956_s19   ;;  %s705_s18 = sphi %s757_s18, %s955_s18  }
   0x6   : > { %s782_s24 = sadd.s32 1, %s717_s21   ;;  %s28_s25 = sadd.s32 1, %s713_s20 }
   0x7   : > { %s25_s26 = ssub.s32 %s717_s21, %s782_s24  ;;  %p35_p0 = scmp.ne.s32.totalorder %s713_s20, %s709_s19 }
   0x8   : > { %p26_p1 = scmp.eq.s32.totalorder %s25_s26, 0  ;;  %p36_p2 = scmp.eq.s32.totalorder %s717_s21, 0 }
   0x9   : > { %p41_p3 = scmp.ne.s32.totalorder %s709_s19, %s705_s18  ;;  %p42_p4 = scmp.eq.s32.totalorder %s778_s22, 0 }
   0xa   : > { %s794_s27 = scalar_select %p26_p1, %s713_s20, %s28_s25  }
   0xb   : > { %p796_p5 = por %p36_p2, %p35_p0  ;;  %p800_p6 = por %p42_p4, %p41_p3 }
   0xc   : > { %p149_p7 = scmp.eq.s32.totalorder %s778_s22, 1  ;;  %p155_p8 = scmp.eq.s32.totalorder %s537_s23, 1 }
   0xd   : > { %s947_s29 = scalar_select %p800_p6, 1, 0 }
   0xe   : > { %p585_p10 = scmp.lt.s32.totalorder %s717_s21, 2  ;;  %p807_p11 = por %p149_p7, %p35_p0 }
   0xf   : > { %p811_p12 = por %p155_p8, %p41_p3  ;;  %s187_s7 = sand.u32 1, %s713_s20  }
  0x10   : > { %s948_s30 = scalar_select %p807_p11, 1, 0 }
  0x11   : > { %s949_s6 = scalar_select %p811_p12, 1, 0 }
  0x12   : > { %s554_s8 = sshll.u32 %s717_s21, 9  ;;  %s540_s9 = sshll.u32 %s187_s7, 5 }
  0x13   : > { %s820_s12 = scalar_lea.hbm %s938_s0, %s554_s8  ;;  %s191_s13 = scalar_lea.vmem [#allocation2], %s540_s9 }
  0x14   : > { %s198_s14 = sshll.u32 %s191_s13, 4  ;;  %p824_p13 = pnand %p585_p10, %p796_p5  ;;  %s828_s14 = int_to_ptr.vmem [resolvable:$true] %s198_s14 }
  0x15   : > { %s830_s16 = scalar_lea.sflag [#allocation3], %s187_s7  ;;  %s625_s17 = scalar_lea.hbm %s820_s12, 512 }
  0x16   : > { %p626_p0 = scmp.ne.s32.totalorder %s820_s12, %s625_s17  ;;  %p627_p1 = pneg %p824_p13 }
  0x17   : > { %s630_s26 = scalar_lea.hbm %s938_s0, 1024  ;;  %p631_p4 = scmp.lt.s32.totalorder %s820_s12, %s938_s0 }
  0x18   : > { %p628_p2 = pnand %p627_p1, %p626_p0  ;;  %p632_p5 = scmp.lt.s32.totalorder %s630_s26, %s625_s17 }
  0x1a   : > { %p629_p3 = pneg %p628_p2  ;;  %p633_p7 = por %p632_p5, %p631_p4 }
  0x1c   : > { %p634_p8 = pnand %p633_p7, %p629_p3 }
  0x1e   : > { %637 = shalt.err (!%p634_p8)
}
  0x1f   : > { %s638_s7 = scalar_lea.vmem %s828_s14, 512  ;;  %s719_s9 = smov [#allocation2]  }
  0x20   : > { %p639_p10 = scmp.ne.s32.totalorder %s828_s14, %s638_s7  ;;  %s643_s10 = sshll.u32 %s719_s9, 4  ;;  %s644_s10 = int_to_ptr.vmem [resolvable:$false] %s643_s10 }
  0x21   : > { %s645_s11 = scalar_lea.vmem %s644_s10, 1024  ;;  %p646_p2 = scmp.lt.s32.totalorder %s828_s14, %s644_s10 }
  0x22   : > { %p641_p9 = pnand %p639_p10, %p627_p1  ;;  %p647_p12 = scmp.lt.s32.totalorder %s645_s11, %s638_s7 }
  0x24   : > { %p642_p0 = pneg %p641_p9  ;;  %p648_p11 = por %p647_p12, %p646_p2 }
  0x26   : > { %p649_p6 = pnand %p648_p11, %p642_p0 }
  0x28   : > { %652 = shalt.err (!%p649_p6)
}
  0x29   : > { %s720_s13 = smov 256   ;;  %s721_s17 = smov 16  }
  0x2a   : > { %580 = dma.hbm_to_vmem [thread:$0]  (!%p824_p13), %s820_s12, 512, %s828_s14, %s830_s16, %s720_s13, %s720_s13, %s721_s17  }
  0x2b   : > { %p543_p9 = scmp.ge.s32.totalorder %s717_s21, 1  ;;  %p206_p1 = scmp.lt.s32.totalorder %s717_s21, 3 }
  0x2d   : > { %p207_p3 = pnand %p543_p9, %p206_p1 }
  0x2e   : > { %s854_s23 = sand.u32 (!%p207_p3), 1, %s709_s19   ;;  %p951_p6 = scmp.ne.s32.totalorder (!%p207_p3), %s947_s29, 0 }
  0x2f   : > { %210 = sbr.rel (%p207_p3) target bundleno = 740 (0x2e4), region = 40  ;;  %s544_s25 = sshll.u32 (!%p207_p3), %s854_s23, 5 }
  0x30   : > { %s213_s26 = scalar_lea.sflag (!%p207_p3), [#allocation3], %s854_s23  ;;  %s216_s28 = scalar_lea.vmem (!%p207_p3), [#allocation2], %s544_s25 }
  0x34   : > { %696 = dma.done.wait (%p951_p6), %s213_s26, 512  }
  0x35   : > { %698 = vsyncadd (%p951_p6), %s213_s26, 4294966784  ;;  %v243_v0 = vld [vmem:[%s216_s28] sm:$0xff]  ;;  %v244_v1 = vld [vmem:[%s216_s28 + $0x8] sm:$0xff]  ;;  %v722_v6 = vmov 0.0   ;;  %vm723_vm0 = vmmov 0   ;;  %v260_v9 = vlaneseq  ;;  %vm271_vm1 = vcmask 130112  }
  0x36   : > { %v864_v2 = vld [vmem:[%s216_s28 + $0x10] sm:$0xff]  ;;  %v247_v3 = vadd.f32 %v244_v1, %v243_v0  ;;  %v866_v4 = vld [vmem:[%s216_s28 + $0x18] sm:$0xff]  ;;  %561 = vmatprep.subr.mxu0 %v722_v6  ;;  %v256_v7 = vld [vmem:[%s939_s1 + $0x8] sm:$0xff]  ;;  %568 = vmatprep.subr.mxu1 %v722_v6  ;;  %vm273_vm2 = vcmask 130048   ;;  %vm353_vm3 = vcmask 1043456   ;;  %vm349_vm4 = vcmask 31744  }
  0x37   : > { %v250_v5 = vadd.f32 %v866_v4, %v864_v2  ;;  %562 = vmatpush3.msra.mxu0 %v256_v7  ;;  %v255_v8 = vld [vmem:[%s939_s1] sm:$0xff]  ;;  %565 = vmatprep.mubr.msk.f32.mxu0 %vm723_vm0, %v722_v6  ;;  %v261_v10 = vand.u32 127, %v260_v9  ;;  %v263_v11 = vshrl.u32 %v260_v9, 7  ;;  %s242_s13 = scalar_lea.vmem [#allocation5], %s544_s25  ;;  %s555_s26 = sshll.u32 %s778_s22, 9 }
  0x38   : > { %248 = vadd.xlane.f32.xlu0 %v247_v3  ;;  %563 = vmatprep.subr.mxu0 %v722_v6  ;;  %v347_v22 = vld [vmem:[%s941_s3] sm:$0xf]  ;;  %s464_s17 = sshll.u32 %s242_s13, 4  ;;  %s893_s14 = scalar_lea.hbm %s943_s5, %s555_s26  ;;  %s888_s17 = int_to_ptr.vmem [resolvable:$true] %s464_s17 }
  0x39   : > { %564 = vmatpush3.msra.mxu0 %v255_v8  ;;  %570 = vmatprep.mubr.msk.f32.mxu1 %vm723_vm0, %v722_v6  ;;  %v266_v12 = vadd.s32 4294967288, %v261_v10  ;;  %v264_v14 = vsub.s32 %v261_v10, %v263_v11  ;;  %v257_v23 = vld [vmem:[%s940_s2] sm:$0x1]  ;;  %v433_v35 = vsub.s32 0, %v263_v11  ;;  %s451_s22 = scalar_lea.sflag [#allocation4], %s854_s23  ;;  %s653_s25 = scalar_lea.vmem %s888_s17, 512 }
  0x3a   : > { %569 = vmatpush3.msk.msra.mxu1 %vm353_vm3, %v347_v22  ;;  %v348_v28 = vld [vmem:[%s942_s4] sm:$0x1]  ;;  %p654_p11 = scmp.ne.s32.totalorder %s888_s17, %s653_s25  ;;  %p952_p12 = scmp.ne.s32.totalorder %s948_s30, 0 }
  0x3b   : > { %v269_v16 = vsub.s32 %v266_v12, %v263_v11  ;;  %s724_s29 = smov [#allocation5]  }
  0x3c   : > { %251 = vadd.xlane.f32.xlu0 %v250_v5  ;;  %p655_p13 = pnand %p654_p11, %p952_p12  ;;  %s657_s15 = sshll.u32 %s724_s29, 4  ;;  %s658_s15 = int_to_ptr.vmem [resolvable:$false] %s657_s15 }
  0x3d   : > { %s659_s16 = scalar_lea.vmem %s658_s15, 1024  ;;  %p660_p5 = scmp.lt.s32.totalorder %s888_s17, %s658_s15 }
  0x3e   : > { %p656_p4 = pneg %p655_p13  ;;  %p661_p7 = scmp.lt.s32.totalorder %s659_s16, %s653_s25 }
  0x40   : > { %p662_p8 = por %p661_p7, %p660_p5 }
  0x42   : > { %p663_p10 = pnand %p662_p8, %p656_p4 }
  0xc1   : > { %v249_v13 = vpop.xlane.xlu0 %248 }
  0xc2   : > { %v253_v15 = vmul.f32 0.0051020407, %v249_v13 }
  0xc4   : > { %v265_v19 = vrot.slane %v253_v15, %v264_v14 }
  0xc5   : > { %v252_v17 = vpop.xlane.xlu0 %251 }
  0xc6   : > { %v254_v18 = vmul.f32 0.0051020407, %v252_v17 }
  0xc8   : > { %v270_v20 = vrot.slane %v254_v18, %v269_v16 }
  0xca   : > { %v272_v21 = vsel %vm271_vm1, %v270_v20, %v265_v19 }
  0xcb   : > { %566 = vmatmul.mubr.msk.f32.vlgmr.msra.gmra.mxu0 %vm273_vm2, %v272_v21 }
 0x18b   : > { %v342_v24 = vpop.f32.mrf.mxu0 }
 0x18c   : > { %v343_v25 = vadd.f32 %v342_v24, %v257_v23 }
 0x18d   : > { %v567_v26 = vpop.f32.mrf.mxu0 }
 0x18e   : > { %v346_v27 = vmax.f32 %v343_v25, 0.0 }
 0x190   : > { %571 = vmatmul.mubr.msk.f32.vlgmr.msra.gmra.mxu1 %vm349_vm4, %v346_v27 }
 0x250   : > { %v423_v29 = vpop.f32.mrf.mxu1 }
 0x251   : > { %v424_v30 = vadd.f32 %v423_v29, %v348_v28 }
 0x252   : > { %v572_v31 = vpop.f32.mrf.mxu1 }
 0x253   : > { %v427_v32 = vadd.f32 3.0, %v424_v30 }
 0x255   : > { %v428_v33 = vmax.f32 %v427_v32, 0.0 }
 0x257   : > { %v429_v34 = vmin.f32 %v428_v33, 6.0 }
 0x259   : > { %v430_v36 = vmul.f32 0.16666667, %v429_v34 }
 0x25b   : > { %v434_v37 = vrot.slane %v430_v36, %v433_v35 }
 0x25d   : > { %436 = vbcast.lane.b32.xlu1 %v434_v37, 256 }
 0x261   : > { %440 = vbcast.lane.b32.xlu1 %v434_v37, 264 }
 0x2cf   : > { %v437_v38 = vpop.permute.xlu1 %436 }
 0x2d0   : > { %v442_v39 = vmul.f32 %v437_v38, %v243_v0  ;;  %v443_v40 = vmul.f32 %v437_v38, %v244_v1 }
 0x2d2   : > { %446 = vst [vmem:[%s242_s13] sm:$0xff] %v442_v39  ;;  %447 = vst [vmem:[%s242_s13 + $0x8] sm:$0xff] %v443_v40 }
 0x2d3   : > { %v441_v41 = vpop.permute.xlu1 %440 }
 0x2d4   : > { %v444_v42 = vmul.f32 %v441_v41, %v864_v2  ;;  %v445_v43 = vmul.f32 %v441_v41, %v866_v4 }
 0x2d6   : > { %448 = vst [vmem:[%s242_s13 + $0x10] sm:$0xff] %v444_v42  ;;  %449 = vst [vmem:[%s242_s13 + $0x18] sm:$0xff] %v445_v43 }
 0x2d7   : > { %666 = shalt.err (!%p663_p10)
}
 0x2d8   : > { %s667_s8 = scalar_lea.hbm %s893_s14, 512  ;;  %s671_s10 = scalar_lea.hbm %s943_s5, 1024 }
 0x2d9   : > { %p668_p0 = scmp.ne.s32.totalorder %s893_s14, %s667_s8  ;;  %p672_p1 = scmp.lt.s32.totalorder %s893_s14, %s943_s5 }
 0x2da   : > { %p673_p3 = scmp.lt.s32.totalorder %s671_s10, %s667_s8 }
 0x2db   : > { %p669_p2 = pnand %p668_p0, %p952_p12 }
 0x2dc   : > { %p674_p6 = por %p673_p3, %p672_p1 }
 0x2dd   : > { %p670_p9 = pneg %p669_p2 }
 0x2df   : > { %p675_p11 = pnand %p674_p6, %p670_p9 }
 0x2e1   : > { %678 = shalt.err (!%p675_p11)
}
 0x2e2   : > { %s725_s26 = smov 256   ;;  %s726_s28 = smov 16  }
 0x2e3   : > { %575 = dma.vmem_to_hbm [thread:$0]  (%p952_p12), %s888_s17, 512, %s893_s14, %s451_s22, %s725_s26, %s725_s26, %s726_s28  }
 0x2e4 PF: > { %s479_s12 = sand.u32 1, %s705_s18   ;;  %p953_p13 = scmp.ne.s32.totalorder %s949_s6, 0 }
 0x2e5   : > { %p954_p4 = scmp.ge.s32.totalorder %s717_s21, 2  ;;  %s480_s25 = scalar_lea.sflag [#allocation4], %s479_s12 }
 0x2e7   : > { %p582_p5 = pnand %p954_p4, %p953_p13 }
 0x2e9   : > { %p583_p7 = pneg %p582_p5 }
 0x2eb   : > { %700 = dma.done.wait (%p583_p7), %s480_s25, 512  }
 0x2ec   : > { %702 = vsyncadd (%p583_p7), %s480_s25, 4294966784  ;;  %p18_p8 = scmp.ge.s32.totalorder %s782_s24, 4   ;;  %s955_s18 = smov %s709_s19 }
 0x2ed   : > { %s956_s19 = smov %s713_s20  ;;  %s957_s20 = smov %s794_s27 }
 0x2ee   : > { %s958_s21 = smov %s782_s24  ;;  %20 = sbr.rel (!%p18_p8) target bundleno = 5 (0x5), region = 85 }
 0x2f3   :  { %485 = vsyncpa [#allocation3], 1 }
 0x2f4   :  { %487 = vsyncpa [#allocation3 + $0x1], 1 }
 0x2f5   :  { %488 = vsyncpa [#allocation4], 1 }
 0x2f6   :  { %490 = vsyncpa [#allocation4 + $0x1], 1 }

</bundles_post_ra>
